<compile_context>
chip_gen: v5e
topology: v5e:2x2
jax: 0.10.0
libtpu: 0.0.40
codegen_flags: <defaults>
</compile_context>

<pallas_src>
import functools

import jax
import jax.numpy as jnp
from jax.experimental import pallas as pl
from jax.experimental.pallas import tpu as pltpu

LANE = 128
SUBLANE = 8
NEG_INF = -1e30


def _round_up(n: int, m: int) -> int:
    return ((n + m - 1) // m) * m


def _batch_tiling(batch: int, max_tile: int = 512):
    """Equal batch tiles: rows % 8 == 0, <= max_tile rows, minimal padding.

    Prefers >= 2 tiles when the batch allows so v7x's two TensorCores get a
    balanced split of the "parallel" grid axis (e.g. B=160 -> 2 x 80, not
    128 + 32 with 96 padded rows)."""
    b8 = _round_up(batch, SUBLANE)
    n = max(1, pl.cdiv(b8, max_tile))
    if n < 2 and b8 >= 2 * SUBLANE:
        n = 2
    tb = _round_up(pl.cdiv(b8, n), SUBLANE)
    n = pl.cdiv(b8, tb)
    return tb, tb * n


def _mlp_kernel(x_ref, w1_ref, b1_ref, w2_ref, b2_ref, o_ref):
    # fc1: cast x to bf16 in-kernel (avoids a separate pre-kernel XLA pad/cast
    # pass over x in HBM); MXU matmul with f32 accumulation; f32 bias + ReLU.
    x = x_ref[...].astype(w1_ref.dtype)
    h = jnp.dot(x, w1_ref[...], preferred_element_type=jnp.float32)
    h = jnp.maximum(h + b1_ref[...], 0.0)

    # fc2 (f32 accumulation).  Padded output lanes: W2 pad columns are zero
    # and b2 pad lanes hold -1e30, so padded logits ~ -1e30 -> exp() == 0.
    # No in-kernel iota/where masking needed.
    logits = jnp.dot(h.astype(w2_ref.dtype), w2_ref[...],
                     preferred_element_type=jnp.float32) + b2_ref[...]

    # Numerically stable softmax over dim=1 with exact normalization.
    m = jnp.max(logits, axis=-1, keepdims=True)
    e = jnp.exp(logits - m)
    denom = jnp.sum(e, axis=-1, keepdims=True)          # >= 1, safe
    o_ref[...] = (e * pl.reciprocal(denom, approx=False)).astype(o_ref.dtype)


def prepare_params(w1, b1, w2, b2):
    """One-time host-side parameter prep (call ONCE, reuse every step).

    Only the output feature dim is padded to 128 lanes; matmul operands are
    cast to bf16 (f32 MXU accumulation in-kernel); b2's pad lanes are set to
    -1e30 so the softmax pad mask is free.  Weights are stored transposed vs
    PyTorch, i.e. (in_features, out_features)."""
    hid = w1.shape[1]
    out = w2.shape[1]
    out_pad = _round_up(out, LANE)
    w1_p = w1.astype(jnp.bfloat16)                                  # (in, hid)
    b1_p = b1.reshape(1, hid).astype(jnp.float32)                   # (1, hid)
    w2_p = jnp.pad(w2, ((0, 0), (0, out_pad - out))).astype(jnp.bfloat16)
    b2_p = jnp.pad(b2.reshape(1, out).astype(jnp.float32),
                   ((0, 0), (0, out_pad - out)), constant_values=NEG_INF)
    return w1_p, b1_p, w2_p, b2_p


@functools.partial(jax.jit, static_argnames=("out_size", "max_tile"))
def simple_neural_network(x, w1_p, b1_p, w2_p, b2_p, *, out_size, max_tile=512):
    """Forward pass: softmax(relu(x @ W1 + b1) @ W2 + b2), one Pallas kernel.

    x: (B, input_size) float32; params from prepare_params().
    Returns (B, out_size) float32."""
    B, in_size = x.shape
    hid = w1_p.shape[1]
    out_pad = w2_p.shape[1]

    tb, b_pad = _batch_tiling(B, max_tile)
    grid = (b_pad // tb,)
    if b_pad != B:                                   # at most 7 zero rows
        x = jnp.pad(x, ((0, b_pad - B), (0, 0)))

    flops = 2 * b_pad * (in_size * hid + hid * out_pad)
    bytes_accessed = (x.size * x.dtype.itemsize
                      + w1_p.size * 2 + w2_p.size * 2
                      + b1_p.size * 4 + b2_p.size * 4
                      + b_pad * out_pad * 4)

    y_pad = pl.pallas_call(
        _mlp_kernel,
        out_shape=jax.ShapeDtypeStruct((b_pad, out_pad), jnp.float32),
        grid=grid,
        in_specs=[
            pl.BlockSpec((tb, in_size), lambda i: (i, 0)),     # x: blocked on batch
            pl.BlockSpec((in_size, hid), lambda i: (0, 0)),    # W1: VMEM-resident
            pl.BlockSpec((1, hid), lambda i: (0, 0)),          # b1
            pl.BlockSpec((hid, out_pad), lambda i: (0, 0)),    # W2 (zero-padded cols)
            pl.BlockSpec((1, out_pad), lambda i: (0, 0)),      # b2 (pad lanes -1e30)
        ],
        out_specs=pl.BlockSpec((tb, out_pad), lambda i: (i, 0)),
        compiler_params=pltpu.CompilerParams(
            dimension_semantics=("parallel",)),                # megacore batch split
        cost_estimate=pl.CostEstimate(
            flops=flops,
            transcendentals=b_pad * out_pad + b_pad,
            bytes_accessed=bytes_accessed),
    )(x, w1_p, b1_p, w2_p, b2_p)

    return y_pad[:B, :out_size]


def _reference_f32(x, w1, b1, w2, b2):
    h = jnp.maximum(x @ w1 + b1.reshape(1, -1), 0.0)
    return jax.nn.softmax(h @ w2 + b2.reshape(1, -1), axis=1)


def _reference_bf16(x, w1, b1, w2, b2):
    # Mirrors the kernel's bf16 operand quantization with f32 accumulation.
    xb = x.astype(jnp.bfloat16).astype(jnp.float32)
    w1b = w1.astype(jnp.bfloat16).astype(jnp.float32)
    w2b = w2.astype(jnp.bfloat16).astype(jnp.float32)
    h = jnp.maximum(xb @ w1b + b1.reshape(1, -1), 0.0)
    hb = h.astype(jnp.bfloat16).astype(jnp.float32)
    return jax.nn.softmax(hb @ w2b + b2.reshape(1, -1), axis=1)


if __name__ == "__main__":
    # Small shapes consistent with the module's forward; batch=160 exercises
    # the two balanced 80-row tiles (no batch padding, grid=(2,)).
    batch, input_size, hidden_size, output_size = 160, 32, 64, 16

    key = jax.random.PRNGKey(0)
    kx, k1, k2, k3, k4 = jax.random.split(key, 5)

    x = jax.random.normal(kx, (batch, input_size), dtype=jnp.float32)

    # Deterministic parameter init (PyTorch-Linear-like uniform bounds).
    bound1 = 1.0 / (input_size ** 0.5)
    w1 = jax.random.uniform(k1, (input_size, hidden_size), jnp.float32, -bound1, bound1)
    b1 = jax.random.uniform(k2, (hidden_size,), jnp.float32, -bound1, bound1)

    bound2 = 1.0 / (hidden_size ** 0.5)
    w2 = jax.random.uniform(k3, (hidden_size, output_size), jnp.float32, -bound2, bound2)
    b2 = jax.random.uniform(k4, (output_size,), jnp.float32, -bound2, bound2)

    # One-time param prep (pad/cast), then the fused forward.
    w1_p, b1_p, w2_p, b2_p = prepare_params(w1, b1, w2, b2)
    out = simple_neural_network(x, w1_p, b1_p, w2_p, b2_p, out_size=output_size)
    out = jax.block_until_ready(out)

    ref_q = _reference_bf16(x, w1, b1, w2, b2)
    ref_f = _reference_f32(x, w1, b1, w2, b2)

    assert out.shape == (batch, output_size)
    assert jnp.allclose(jnp.sum(out, axis=1), 1.0, atol=1e-4), "softmax rows must sum to ~1"
    assert jnp.allclose(out, ref_q, atol=1e-2, rtol=1e-2), "mismatch vs bf16-matched reference"
    assert jnp.allclose(out, ref_f, atol=3e-2, rtol=3e-2), "mismatch vs f32 reference"

    print("KERNEL_OK")
</pallas_src>

<mosaic_0001>
module attributes {stable_mosaic.version = 11 : i64} {
  func.func @_mlp_kernel(%arg0: i32, %arg1: memref<80x32xf32, #tpu.memory_space<vmem>>, %arg2: memref<32x64xbf16, #tpu.memory_space<vmem>>, %arg3: memref<1x64xf32, #tpu.memory_space<vmem>>, %arg4: memref<64x128xbf16, #tpu.memory_space<vmem>>, %arg5: memref<1x128xf32, #tpu.memory_space<vmem>>, %arg6: memref<80x128xf32, #tpu.memory_space<vmem>>) attributes {dimension_semantics = [#tpu.dimension_semantics<parallel>], iteration_bounds = array<i64: 2>, scalar_prefetch = 0 : i64, scratch_operands = 0 : i64, tpu.core_type = #tpu.core_type<tc>, window_params = [{transform_indices = @transform_0, window_bounds = array<i64: 80, 32>}, {pipeline_mode = #tpu.pipeline_mode<synchronous>, transform_indices = @transform_1, window_bounds = array<i64: 32, 64>}, {pipeline_mode = #tpu.pipeline_mode<synchronous>, transform_indices = @transform_2, window_bounds = array<i64: 1, 64>}, {pipeline_mode = #tpu.pipeline_mode<synchronous>, transform_indices = @transform_3, window_bounds = array<i64: 64, 128>}, {pipeline_mode = #tpu.pipeline_mode<synchronous>, transform_indices = @transform_4, window_bounds = array<i64: 1, 128>}, {transform_indices = @transform_5, window_bounds = array<i64: 80, 128>}]} {
    %c0 = arith.constant 0 : index
    %c0_0 = arith.constant 0 : index
    %0 = vector.load %arg1[%c0, %c0_0] : memref<80x32xf32, #tpu.memory_space<vmem>>, vector<80x32xf32>
    %1 = arith.truncf %0 : vector<80x32xf32> to vector<80x32xbf16>
    %c0_1 = arith.constant 0 : index
    %c0_2 = arith.constant 0 : index
    %2 = vector.load %arg2[%c0_1, %c0_2] : memref<32x64xbf16, #tpu.memory_space<vmem>>, vector<32x64xbf16>
    %cst = arith.constant dense<0.000000e+00> : vector<80x64xf32>
    %3 = tpu.matmul %1, %2, %cst {dimension_numbers = #tpu.dot_dimension_numbers<[1], [0], [0], [1], [0, 0, 1, 1], [], []>} : vector<80x32xbf16>, vector<32x64xbf16>, vector<80x64xf32> -> vector<80x64xf32>
    %c0_3 = arith.constant 0 : index
    %c0_4 = arith.constant 0 : index
    %4 = vector.load %arg3[%c0_3, %c0_4] : memref<1x64xf32, #tpu.memory_space<vmem>>, vector<1x64xf32>
    %5 = vector.broadcast %4 : vector<1x64xf32> to vector<80x64xf32>
    %6 = arith.addf %3, %5 : vector<80x64xf32>
    %cst_5 = arith.constant 0.000000e+00 : f32
    %7 = vector.broadcast %cst_5 : f32 to vector<80x64xf32>
    %8 = arith.maximumf %6, %7 : vector<80x64xf32>
    %9 = arith.truncf %8 : vector<80x64xf32> to vector<80x64xbf16>
    %c0_6 = arith.constant 0 : index
    %c0_7 = arith.constant 0 : index
    %10 = vector.load %arg4[%c0_6, %c0_7] : memref<64x128xbf16, #tpu.memory_space<vmem>>, vector<64x128xbf16>
    %cst_8 = arith.constant dense<0.000000e+00> : vector<80x128xf32>
    %11 = tpu.matmul %9, %10, %cst_8 {dimension_numbers = #tpu.dot_dimension_numbers<[1], [0], [0], [1], [0, 0, 1, 1], [], []>} : vector<80x64xbf16>, vector<64x128xbf16>, vector<80x128xf32> -> vector<80x128xf32>
    %c0_9 = arith.constant 0 : index
    %c0_10 = arith.constant 0 : index
    %12 = vector.load %arg5[%c0_9, %c0_10] : memref<1x128xf32, #tpu.memory_space<vmem>>, vector<1x128xf32>
    %13 = vector.broadcast %12 : vector<1x128xf32> to vector<80x128xf32>
    %14 = arith.addf %11, %13 : vector<80x128xf32>
    %cst_11 = arith.constant dense<0xFF800000> : vector<80xf32>
    %15 = vector.multi_reduction <maximumf>, %14, %cst_11 [1] : vector<80x128xf32> to vector<80xf32>
    %16 = vector.shape_cast %15 : vector<80xf32> to vector<80x1xf32>
    %17 = vector.broadcast %16 : vector<80x1xf32> to vector<80x128xf32>
    %18 = arith.subf %14, %17 : vector<80x128xf32>
    %19 = math.exp %18 : vector<80x128xf32>
    %cst_12 = arith.constant dense<0.000000e+00> : vector<80xf32>
    %20 = vector.multi_reduction <add>, %19, %cst_12 [1] : vector<80x128xf32> to vector<80xf32>
    %21 = vector.shape_cast %20 : vector<80xf32> to vector<80x1xf32>
    %22 = tpu.reciprocal %21 : vector<80x1xf32> -> vector<80x1xf32>
    %23 = vector.broadcast %22 : vector<80x1xf32> to vector<80x128xf32>
    %24 = arith.mulf %19, %23 : vector<80x128xf32>
    %c0_13 = arith.constant 0 : index
    %c0_14 = arith.constant 0 : index
    %25 = vector.load %arg6[%c0_13, %c0_14] : memref<80x128xf32, #tpu.memory_space<vmem>>, vector<80x128xf32>
    tpu.vector_store %arg6[%c0_13, %c0_14], %24 {strides = array<i32>} : memref<80x128xf32, #tpu.memory_space<vmem>>, vector<80x128xf32>,
    return
  }
  func.func @transform_0(%arg0: i32) -> (i32, i32) {
    %c0_i32 = arith.constant 0 : i32
    %c0_i32_0 = arith.constant 0 : i32
    return %arg0, %c0_i32 : i32, i32
  }
  func.func @transform_1(%arg0: i32) -> (i32, i32) {
    %c0_i32 = arith.constant 0 : i32
    %c0_i32_0 = arith.constant 0 : i32
    %c0_i32_1 = arith.constant 0 : i32
    return %c0_i32, %c0_i32_0 : i32, i32
  }
  func.func @transform_2(%arg0: i32) -> (i32, i32) {
    %c0_i32 = arith.constant 0 : i32
    %c0_i32_0 = arith.constant 0 : i32
    %c0_i32_1 = arith.constant 0 : i32
    return %c0_i32, %c0_i32_0 : i32, i32
  }
  func.func @transform_3(%arg0: i32) -> (i32, i32) {
    %c0_i32 = arith.constant 0 : i32
    %c0_i32_0 = arith.constant 0 : i32
    %c0_i32_1 = arith.constant 0 : i32
    return %c0_i32, %c0_i32_0 : i32, i32
  }
  func.func @transform_4(%arg0: i32) -> (i32, i32) {
    %c0_i32 = arith.constant 0 : i32
    %c0_i32_0 = arith.constant 0 : i32
    %c0_i32_1 = arith.constant 0 : i32
    return %c0_i32, %c0_i32_0 : i32, i32
  }
  func.func @transform_5(%arg0: i32) -> (i32, i32) {
    %c0_i32 = arith.constant 0 : i32
    %c0_i32_0 = arith.constant 0 : i32
    return %arg0, %c0_i32 : i32, i32
  }
}

</mosaic_0001>

<bundles_post_ra>
// kernel: simple_neural_network.1
= control target key start
LH: loop header
LB: loop body
LE: loop exit
PB: predicated region body
PF: predicated region fallthrough
CT: control target
= control target key end

     0   :  { %s844_s18 = smov 0   ;;  %s975_s0 = inlined_call_operand.vmem [shape: f32[160,32], index: 0, kind: input, shape index: {}]   ;;  %s976_s1 = inlined_call_operand.vmem [shape: bf16[32,64], index: 1, kind: input, shape index: {}]   ;;  %s977_s2 = inlined_call_operand.vmem [shape: f32[1,64], index: 2, kind: input, shape index: {}]   ;;  %s978_s3 = inlined_call_operand.vmem [shape: bf16[64,128], index: 3, kind: input, shape index: {}]   ;;  %s979_s4 = inlined_call_operand.vmem [shape: f32[1,128], index: 4, kind: input, shape index: {}]   ;;  %s980_s5 = inlined_call_operand.vmem [shape: f32[160,128], index: 5, kind: output, shape index: {}]  }
   0x1 LB: > { %s701_s19 = sadd.s32 4294967295, %s812_s18   ;;  %p705_p0 = scmp.ge.s32.totalorder %s812_s18, 1  ;;  %s812_s18 = sphi %s844_s18, %s15_s18  }
   0x2   : > { %p188_p1 = scmp.lt.s32.totalorder %s812_s18, 3 }
   0x4   : > { %p189_p2 = pnand %p705_p0, %p188_p1 }
   0x5   : > { %s216_s22 = smul.u32 (!%p189_p2), 10, %s701_s19 }
   0x6   : > { %192 = sbr.rel (%p189_p2) target bundleno = 598 (0x256), region = 40 }
   0x7   : > { %p217_p3 = scmp.lt.s32.totalorder (!%p189_p2), %s216_s22, 19 }
   0xb   : > { %v745_v0 = vld [vmem:[%s976_s1 + $0x8] sm:$0xff]  ;;  %v744_v1 = vld [vmem:[%s976_s1] sm:$0xff]  ;;  %s984_s22 = smov (!%p217_p3, %s216_s22), 19  ;;  %vm264_vm0 = vcmask 261120   ;;  %v749_v17 = vld [vmem:[%s978_s3 + $0x18] sm:$0xff]  ;;  %vm365_vm1 = vcmask 523264  }
   0xc   : > { %286 = vmatpush.bf16.msra.mxu0 %v745_v0  ;;  %750 = vmatpush.bf16.msra.mxu3 %v745_v0  ;;  %s706_s25 = sshll.u32 %s984_s22, 3  ;;  %v748_v18 = vld [vmem:[%s978_s3 + $0x10] sm:$0xff]  ;;  %v747_v19 = vld [vmem:[%s978_s3 + $0x8] sm:$0xff]  ;;  %v746_v20 = vld [vmem:[%s978_s3] sm:$0xff] }
   0xd   : > { %s220_s28 = scalar_lea.vmem %s975_s0, %s706_s25  ;;  %385 = vmatpush.bf16.msra.mxu1 %v749_v17  ;;  %752 = vmatpush.bf16.msra.mxu2 %v749_v17  ;;  %v764_v22 = vld [vmem:[%s977_s2] ss:$0 sm:$0xff]  ;;  %s929_s19 = scalar_lea.vmem %s980_s5, %s706_s25 }
   0xe   : > { %v229_v2 = vld [vmem:[%s220_s28] sm:$0xff]  ;;  %v230_v3 = vld [vmem:[%s220_s28 + $0x8] sm:$0xff]  ;;  %v235_v4 = vld [vmem:[%s220_s28 + $0x30] sm:$0xff] }
   0xf   : > { %v239_v5 = vpack.c.bf16 %v230_v3, %v229_v2  ;;  %v236_v6 = vld [vmem:[%s220_s28 + $0x38] sm:$0xff]  ;;  %v231_v8 = vld [vmem:[%s220_s28 + $0x10] sm:$0xff]  ;;  %v237_v10 = vld [vmem:[%s220_s28 + $0x40] sm:$0xff] }
  0x10   : > { %287 = vmatpush.bf16.msra.mxu0 %v744_v1  ;;  %751 = vmatpush.bf16.msra.mxu3 %v744_v1  ;;  %v242_v7 = vpack.c.bf16 %v236_v6, %v235_v4  ;;  %v232_v9 = vld [vmem:[%s220_s28 + $0x18] sm:$0xff]  ;;  %v238_v11 = vld [vmem:[%s220_s28 + $0x48] sm:$0xff]  ;;  %v233_v14 = vld [vmem:[%s220_s28 + $0x20] sm:$0xff] }
  0x11   : > { %v240_v12 = vpack.c.bf16 %v232_v9, %v231_v8  ;;  %v243_v13 = vpack.c.bf16 %v238_v11, %v237_v10  ;;  %v234_v15 = vld [vmem:[%s220_s28 + $0x28] sm:$0xff]  ;;  %386 = vmatpush.bf16.msra.mxu1 %v748_v18  ;;  %753 = vmatpush.bf16.msra.mxu2 %v748_v18  ;;  %v765_v57 = vld [vmem:[%s979_s4] ss:$0 sm:$0xff] }
  0x12   : > { %v241_v16 = vpack.c.bf16 %v234_v15, %v233_v14 }
  0x13   : > { %716 = vmatmul.msk.bf16.vlgmr.msra.gmra.mxu0 %vm264_vm0, %v239_v5  ;;  %719 = vmatmul.msk.bf16.vlgmr.msra.gmra.mxu3 %vm264_vm0, %v242_v7 }
  0x15   : > { %387 = vmatpush.bf16.msra.mxu1 %v747_v19  ;;  %754 = vmatpush.bf16.msra.mxu2 %v747_v19 }
  0x19   : > { %388 = vmatpush.bf16.msra.mxu1 %v746_v20  ;;  %755 = vmatpush.bf16.msra.mxu2 %v746_v20 }
  0x23   : > { %717 = vmatmul.msk.bf16.gmra.mxu0 %vm264_vm0, %v240_v12  ;;  %720 = vmatmul.msk.bf16.gmra.mxu3 %vm264_vm0, %v243_v13 }
  0x33   : > { %718 = vmatmul.msk.bf16.gmra.mxu0 %vm264_vm0, %v241_v16 }
  0x90   : > { %v289_v21 = vpop.f32.mrf.mxu0 }
  0x91   : > { %v290_v23 = vadd.f32 %v764_v22, %v289_v21 }
  0x93   : > { %v314_v27 = vmax.f32 %v290_v23, 0.0 }
  0x96   : > { %v304_v24 = vpop.f32.mrf.mxu3 }
  0x97   : > { %v305_v29 = vadd.f32 %v764_v22, %v304_v24 }
  0x98   : > { %v291_v25 = vpop.f32.mrf.mxu0 }
  0x99   : > { %v292_v26 = vadd.f32 %v764_v22, %v291_v25  ;;  %v320_v32 = vmax.f32 %v305_v29, 0.0 }
  0x9b   : > { %v315_v28 = vmax.f32 %v292_v26, 0.0 }
  0x9d   : > { %v324_v30 = vpack.c.bf16 %v315_v28, %v314_v27 }
  0x9e   : > { %v306_v31 = vpop.f32.mrf.mxu3 }
  0x9f   : > { %737 = vmatmul.msk.bf16.vlgmr.msra.gmra.mxu1 %vm365_vm1, %v324_v30  ;;  %v307_v33 = vadd.f32 %v764_v22, %v306_v31 }
  0xa0   : > { %v294_v34 = vpop.f32.mrf.mxu0 }
  0xa1   : > { %v321_v35 = vmax.f32 %v307_v33, 0.0  ;;  %v295_v37 = vadd.f32 %v764_v22, %v294_v34 }
  0xa3   : > { %v327_v36 = vpack.c.bf16 %v321_v35, %v320_v32  ;;  %v316_v41 = vmax.f32 %v295_v37, 0.0 }
  0xa5   : > { %740 = vmatmul.msk.bf16.vlgmr.msra.gmra.mxu2 %vm365_vm1, %v327_v36 }
  0xa6   : > { %v309_v38 = vpop.f32.mrf.mxu3 }
  0xa7   : > { %v310_v43 = vadd.f32 %v764_v22, %v309_v38 }
  0xa8   : > { %v296_v39 = vpop.f32.mrf.mxu0 }
  0xa9   : > { %v297_v40 = vadd.f32 %v764_v22, %v296_v39  ;;  %v322_v46 = vmax.f32 %v310_v43, 0.0 }
  0xab   : > { %v317_v42 = vmax.f32 %v297_v40, 0.0 }
  0xad   : > { %v325_v44 = vpack.c.bf16 %v317_v42, %v316_v41 }
  0xae   : > { %v311_v45 = vpop.f32.mrf.mxu3 }
  0xaf   : > { %738 = vmatmul.msk.bf16.gmra.mxu1 %vm365_vm1, %v325_v44  ;;  %v312_v47 = vadd.f32 %v764_v22, %v311_v45 }
  0xb0   : > { %v299_v48 = vpop.f32.mrf.mxu0 }
  0xb1   : > { %v323_v49 = vmax.f32 %v312_v47, 0.0  ;;  %v300_v51 = vadd.f32 %v764_v22, %v299_v48 }
  0xb3   : > { %v328_v50 = vpack.c.bf16 %v323_v49, %v322_v46  ;;  %v318_v54 = vmax.f32 %v300_v51, 0.0 }
  0xb5   : > { %741 = vmatmul.msk.bf16.gmra.mxu2 %vm365_vm1, %v328_v50 }
  0xb8   : > { %v301_v52 = vpop.f32.mrf.mxu0 }
  0xb9   : > { %v302_v53 = vadd.f32 %v764_v22, %v301_v52 }
  0xbb   : > { %v319_v55 = vmax.f32 %v302_v53, 0.0 }
  0xbd   : > { %v326_v56 = vpack.c.bf16 %v319_v55, %v318_v54 }
  0xbf   : > { %739 = vmatmul.msk.bf16.gmra.mxu1 %vm365_vm1, %v326_v56 }
 0x11c   : > { %v390_v58 = vpop.f32.mrf.mxu1 }
 0x11d   : > { %v391_v59 = vadd.f32 %v765_v57, %v390_v58 }
 0x11f   : > { %415 = vmax.xlane.f32.xlu0 %v391_v59 }
 0x124   : > { %v392_v60 = vpop.f32.mrf.mxu1 }
 0x125   : > { %v393_v61 = vadd.f32 %v765_v57, %v392_v60 }
 0x127   : > { %417 = vmax.xlane.f32.xlu0 %v393_v61 }
 0x128   : > { %v405_v62 = vpop.f32.mrf.mxu2 }
 0x129   : > { %v406_v63 = vadd.f32 %v765_v57, %v405_v62 }
 0x12c   : > { %v395_v0 = vpop.f32.mrf.mxu1 }
 0x12d   : > { %v396_v1 = vadd.f32 %v765_v57, %v395_v0 }
 0x12f   : > { %419 = vmax.xlane.f32.xlu1 %v396_v1  ;;  %427 = vmax.xlane.f32.xlu0 %v406_v63 }
 0x130   : > { %v407_v2 = vpop.f32.mrf.mxu2 }
 0x131   : > { %v408_v7 = vadd.f32 %v765_v57, %v407_v2 }
 0x134   : > { %v397_v3 = vpop.f32.mrf.mxu1 }
 0x135   : > { %v398_v4 = vadd.f32 %v765_v57, %v397_v3 }
 0x137   : > { %421 = vmax.xlane.f32.xlu1 %v398_v4 }
 0x138   : > { %v410_v5 = vpop.f32.mrf.mxu2 }
 0x139   : > { %v411_v13 = vadd.f32 %v765_v57, %v410_v5 }
 0x13c   : > { %v400_v6 = vpop.f32.mrf.mxu1 }
 0x13d   : > { %v401_v8 = vadd.f32 %v765_v57, %v400_v6 }
 0x13f   : > { %423 = vmax.xlane.f32.xlu2 %v401_v8  ;;  %429 = vmax.xlane.f32.xlu1 %v408_v7 }
 0x140   : > { %v412_v9 = vpop.f32.mrf.mxu2 }
 0x141   : > { %v413_v10 = vadd.f32 %v765_v57, %v412_v9 }
 0x143   : > { %433 = vmax.xlane.f32.xlu0 %v413_v10 }
 0x144   : > { %v402_v11 = vpop.f32.mrf.mxu1 }
 0x145   : > { %v403_v12 = vadd.f32 %v765_v57, %v402_v11 }
 0x147   : > { %425 = vmax.xlane.f32.xlu2 %v403_v12 }
 0x14f   : > { %431 = vmax.xlane.f32.xlu2 %v411_v13 }
 0x192   : > { %v416_v14 = vpop.xlane.xlu0 %415 }
 0x193   : > { %v435_v15 = vsub.f32 %v391_v59, %v416_v14 }
 0x195   : > { %v445_v16 = vmul.f32 1.442695, %v435_v15 }
 0x197   : > { %766 = vpow2.f32 %v445_v16 }
 0x19a   : > { %v418_v17 = vpop.xlane.xlu0 %417 }
 0x19b   : > { %v436_v18 = vsub.f32 %v393_v61, %v418_v17 }
 0x19d   : > { %v894_v19 = vpop.eup %766  ;;  %v447_v20 = vmul.f32 1.442695, %v436_v18 }
 0x19e   : > { %465 = vadd.xlane.f32.xlu1 %v894_v19 }
 0x19f   : > { %768 = vpow2.f32 %v447_v20 }
 0x1a2   : > { %v420_v21 = vpop.xlane.xlu1 %419  ;;  %v428_v22 = vpop.xlane.xlu0 %427 }
 0x1a3   : > { %v437_v23 = vsub.f32 %v396_v1, %v420_v21  ;;  %v441_v24 = vsub.f32 %v406_v63, %v428_v22 }
 0x1a5   : > { %v897_v25 = vpop.eup %768  ;;  %v449_v26 = vmul.f32 1.442695, %v437_v23  ;;  %v457_v27 = vmul.f32 1.442695, %v441_v24 }
 0x1a6   : > { %467 = vadd.xlane.f32.xlu2 %v897_v25 }
 0x1a7   : > { %770 = vpow2.f32 %v449_v26 }
 0x1a8   : > { %772 = vpow2.f32 %v457_v27 }
 0x1aa   : > { %v422_v28 = vpop.xlane.xlu1 %421 }
 0x1ab   : > { %v438_v29 = vsub.f32 %v398_v4, %v422_v28 }
 0x1ad   : > { %v900_v30 = vpop.eup %770  ;;  %v451_v31 = vmul.f32 1.442695, %v438_v29 }
 0x1ae   : > { %v902_v32 = vpop.eup %772  ;;  %469 = vadd.xlane.f32.xlu0 %v900_v30 }
 0x1af   : > { %774 = vpow2.f32 %v451_v31  ;;  %477 = vadd.xlane.f32.xlu1 %v902_v32 }
 0x1b2   : > { %v424_v33 = vpop.xlane.xlu2 %423  ;;  %v430_v35 = vpop.xlane.xlu1 %429 }
 0x1b3   : > { %v439_v34 = vsub.f32 %v401_v8, %v424_v33  ;;  %v442_v38 = vsub.f32 %v408_v7, %v430_v35 }
 0x1b5   : > { %v906_v36 = vpop.eup %774  ;;  %v453_v37 = vmul.f32 1.442695, %v439_v34  ;;  %v459_v41 = vmul.f32 1.442695, %v442_v38 }
 0x1b6   : > { %v434_v39 = vpop.xlane.xlu0 %433 }
 0x1b7   : > { %776 = vpow2.f32 %v453_v37  ;;  %471 = vadd.xlane.f32.xlu1 %v906_v36  ;;  %v444_v40 = vsub.f32 %v413_v10, %v434_v39 }
 0x1b9   : > { %v463_v42 = vmul.f32 1.442695, %v444_v40 }
 0x1ba   : > { %v426_v43 = vpop.xlane.xlu2 %425 }
 0x1bb   : > { %v440_v44 = vsub.f32 %v403_v12, %v426_v43  ;;  %778 = vpow2.f32 %v463_v42 }
 0x1bc   : > { %780 = vpow2.f32 %v459_v41 }
 0x1bd   : > { %v909_v45 = vpop.eup %776  ;;  %v455_v46 = vmul.f32 1.442695, %v440_v44 }
 0x1be   : > { %473 = vadd.xlane.f32.xlu2 %v909_v45 }
 0x1bf   : > { %782 = vpow2.f32 %v455_v46 }
 0x1c1   : > { %v912_v47 = vpop.eup %778 }
 0x1c2   : > { %v432_v48 = vpop.xlane.xlu2 %431  ;;  %483 = vadd.xlane.f32.xlu1 %v912_v47  ;;  %v915_v50 = vpop.eup %780 }
 0x1c3   : > { %v443_v49 = vsub.f32 %v411_v13, %v432_v48 }
 0x1c5   : > { %v917_v51 = vpop.eup %782  ;;  %v461_v52 = vmul.f32 1.442695, %v443_v49 }
 0x1c6   : > { %475 = vadd.xlane.f32.xlu0 %v917_v51  ;;  %479 = vadd.xlane.f32.xlu2 %v915_v50 }
 0x1c7   : > { %784 = vpow2.f32 %v461_v52 }
 0x1cd   : > { %v921_v53 = vpop.eup %784 }
 0x1ce   : > { %481 = vadd.xlane.f32.xlu0 %v921_v53 }
 0x211   : > { %v466_v54 = vpop.xlane.xlu1 %465 }
 0x212   : > { %786 = vrcp.f32 %v466_v54  ;;  %v496_v59 = vand.u32 2147483648, %v466_v54  ;;  %v494_v61 = vand.u32 2147483647, %v466_v54  ;;  %vm490_vm3 = vweird.f32 %v466_v54 }
 0x214   : > { %v497_v0 = vor.u32 1.1754944e-38, %v496_v59  ;;  %vm495_vm5 = vcmp.eq.f32.partialorder %v494_v61, 8.507059e+37 }
 0x218   : > { %v787_v55 = vpop.eup %786 }
 0x219   : > { %v486_v56 = vmul.f32 %v787_v55, %v466_v54  ;;  %v468_v57 = vpop.xlane.xlu2 %467  ;;  %vm491_vm2 = vweird.f32 %v787_v55 }
 0x21a   : > { %788 = vrcp.f32 %v468_v57  ;;  %vm492_vm4 = vmor %vm490_vm3, %vm491_vm2  ;;  %v510_v8 = vand.u32 2147483648, %v468_v57  ;;  %v508_v10 = vand.u32 2147483647, %v468_v57  ;;  %vm504_vm7 = vweird.f32 %v468_v57 }
 0x21b   : > { %v487_v58 = vsub.f32 1.0, %v486_v56 }
 0x21c   : > { %v511_v13 = vor.u32 1.1754944e-38, %v510_v8  ;;  %vm509_vm9 = vcmp.eq.f32.partialorder %v508_v10, 8.507059e+37 }
 0x21d   : > { %v488_v60 = vmul.f32 %v787_v55, %v487_v58 }
 0x21f   : > { %v489_v62 = vadd.f32 %v787_v55, %v488_v60 }
 0x220   : > { %v789_v63 = vpop.eup %788 }
 0x221   : > { %v493_v1 = vsel %vm492_vm4, %v787_v55, %v489_v62  ;;  %v500_v2 = vmul.f32 %v789_v63, %v468_v57  ;;  %v470_v3 = vpop.xlane.xlu0 %469  ;;  %vm505_vm6 = vweird.f32 %v789_v63 }
 0x222   : > { %v498_v4 = vsel %vm495_vm5, %v497_v0, %v493_v1  ;;  %v478_v5 = vpop.xlane.xlu1 %477  ;;  %790 = vrcp.f32 %v470_v3  ;;  %vm506_vm8 = vmor %vm504_vm7, %vm505_vm6  ;;  %v524_v23 = vand.u32 2147483648, %v470_v3  ;;  %v522_v27 = vand.u32 2147483647, %v470_v3 }
 0x223   : > { %v625_v6 = vmul.f32 %v894_v19, %v498_v4  ;;  %v501_v7 = vsub.f32 1.0, %v500_v2  ;;  %792 = vrcp.f32 %v478_v5  ;;  %v580_v24 = vand.u32 2147483648, %v478_v5 }
 0x224   : > { %v578_v29 = vand.u32 2147483647, %v478_v5  ;;  %vm518_vm12 = vweird.f32 %v470_v3  ;;  %vm574_vm13 = vweird.f32 %v478_v5  ;;  %v525_v34 = vor.u32 1.1754944e-38, %v524_v23 }
 0x225   : > { %635 = vst [vmem:[%s929_s19] sm:$0xff] %v625_v6  ;;  %v502_v9 = vmul.f32 %v789_v63, %v501_v7  ;;  %v581_v35 = vor.u32 1.1754944e-38, %v580_v24  ;;  %vm523_vm0 = vcmp.eq.f32.partialorder %v522_v27, 8.507059e+37 }
 0x226   : > { %vm579_vm1 = vcmp.eq.f32.partialorder %v578_v29, 8.507059e+37 }
 0x227   : > { %v503_v11 = vadd.f32 %v789_v63, %v502_v9 }
 0x228   : > { %v791_v12 = vpop.eup %790 }
 0x229   : > { %v793_v14 = vpop.eup %792  ;;  %v507_v15 = vsel %vm506_vm8, %v789_v63, %v503_v11  ;;  %v514_v16 = vmul.f32 %v791_v12, %v470_v3  ;;  %vm519_vm10 = vweird.f32 %v791_v12 }
 0x22a   : > { %v512_v17 = vsel %vm509_vm9, %v511_v13, %v507_v15  ;;  %v570_v18 = vmul.f32 %v793_v14, %v478_v5  ;;  %v472_v19 = vpop.xlane.xlu1 %471  ;;  %vm575_vm11 = vweird.f32 %v793_v14  ;;  %vm520_vm14 = vmor %vm518_vm12, %vm519_vm10 }
 0x22b   : > { %v626_v20 = vmul.f32 %v897_v25, %v512_v17  ;;  %v515_v21 = vsub.f32 1.0, %v514_v16  ;;  %794 = vrcp.f32 %v472_v19  ;;  %vm576_vm15 = vmor %vm574_vm13, %vm575_vm11  ;;  %v538_v48 = vand.u32 2147483648, %v472_v19 }
 0x22c   : > { %v571_v22 = vsub.f32 1.0, %v570_v18  ;;  %v536_v52 = vand.u32 2147483647, %v472_v19  ;;  %vm532_vm3 = vweird.f32 %v472_v19 }
 0x22d   : > { %636 = vst [vmem:[%s929_s19 + $0x8] sm:$0xff] %v626_v20  ;;  %v516_v26 = vmul.f32 %v791_v12, %v515_v21  ;;  %v539_v57 = vor.u32 1.1754944e-38, %v538_v48 }
 0x22e   : > { %v572_v28 = vmul.f32 %v793_v14, %v571_v22  ;;  %vm537_vm5 = vcmp.eq.f32.partialorder %v536_v52, 8.507059e+37 }
 0x22f   : > { %v517_v31 = vadd.f32 %v791_v12, %v516_v26 }
 0x230   : > { %v573_v33 = vadd.f32 %v793_v14, %v572_v28 }
 0x231   : > { %v795_v25 = vpop.eup %794  ;;  %v521_v37 = vsel %vm520_vm14, %v791_v12, %v517_v31  ;;  %v474_v38 = vpop.xlane.xlu2 %473 }
 0x232   : > { %v577_v39 = vsel %vm576_vm15, %v793_v14, %v573_v33  ;;  %v526_v40 = vsel %vm523_vm0, %v525_v34, %v521_v37  ;;  %v528_v41 = vmul.f32 %v795_v25, %v472_v19  ;;  %796 = vrcp.f32 %v474_v38 }
 0x233   : > { %v582_v42 = vsel %vm579_vm1, %v581_v35, %v577_v39  ;;  %v627_v43 = vmul.f32 %v900_v30, %v526_v40  ;;  %vm533_vm2 = vweird.f32 %v795_v25  ;;  %v550_v0 = vand.u32 2147483647, %v474_v38 }
 0x234   : > { %v631_v44 = vmul.f32 %v902_v32, %v582_v42  ;;  %v529_v46 = vsub.f32 1.0, %v528_v41  ;;  %vm534_vm4 = vmor %vm532_vm3, %vm533_vm2  ;;  %v552_v1 = vand.u32 2147483648, %v474_v38  ;;  %vm546_vm7 = vweird.f32 %v474_v38 }
 0x235   : > { %637 = vst [vmem:[%s929_s19 + $0x10] sm:$0xff] %v627_v43  ;;  %v484_v54 = vpop.xlane.xlu1 %483  ;;  %vm551_vm9 = vcmp.eq.f32.partialorder %v550_v0, 8.507059e+37 }
 0x236   : > { %641 = vst [vmem:[%s929_s19 + $0x30] sm:$0xff] %v631_v44  ;;  %v530_v49 = vmul.f32 %v795_v25, %v529_v46  ;;  %798 = vrcp.f32 %v484_v54  ;;  %v620_v4 = vand.u32 2147483647, %v484_v54  ;;  %v622_v8 = vand.u32 2147483648, %v484_v54 }
 0x237   : > { %v553_v9 = vor.u32 1.1754944e-38, %v552_v1  ;;  %vm616_vm10 = vweird.f32 %v484_v54 }
 0x238   : > { %v531_v55 = vadd.f32 %v795_v25, %v530_v49  ;;  %v797_v56 = vpop.eup %796  ;;  %vm948_vm12 = vcmp.eq.f32.partialorder %v620_v4, 8.507059e+37  ;;  %v623_v20 = vor.u32 1.1754944e-38, %v622_v8 }
 0x239   : > { %v939_v58 = vpop.xlane.xlu2 %479  ;;  %v941_v30 = vpop.xlane.xlu0 %475  ;;  %v542_v59 = vmul.f32 %v797_v56, %v474_v38  ;;  %vm547_vm6 = vweird.f32 %v797_v56 }
 0x23a   : > { %v535_v32 = vsel %vm534_vm4, %v795_v25, %v531_v55  ;;  %800 = vrcp.f32 %v939_v58  ;;  %vm548_vm8 = vmor %vm546_vm7, %vm547_vm6  ;;  %v594_v21 = vand.u32 2147483648, %v939_v58  ;;  %v592_v23 = vand.u32 2147483647, %v939_v58 }
 0x23b   : > { %v540_v60 = vsel %vm537_vm5, %v539_v57, %v535_v32  ;;  %v543_v62 = vsub.f32 1.0, %v542_v59  ;;  %802 = vrcp.f32 %v941_v30  ;;  %vm588_vm15 = vweird.f32 %v939_v58 }
 0x23c   : > { %v628_v61 = vmul.f32 %v906_v36, %v540_v60  ;;  %v799_v63 = vpop.eup %798  ;;  %v564_v27 = vand.u32 2147483647, %v941_v30  ;;  %v595_v25 = vor.u32 1.1754944e-38, %v594_v21  ;;  %vm560_vm2 = vweird.f32 %v941_v30 }
 0x23d   : > { %v544_v2 = vmul.f32 %v797_v56, %v543_v62  ;;  %v612_v3 = vmul.f32 %v799_v63, %v484_v54  ;;  %vm617_vm11 = vweird.f32 %v799_v63  ;;  %vm593_vm3 = vcmp.eq.f32.partialorder %v592_v23, 8.507059e+37 }
 0x23e   : > { %638 = vst [vmem:[%s929_s19 + $0x18] sm:$0xff] %v628_v61  ;;  %vm618_vm13 = vmor %vm616_vm10, %vm617_vm11  ;;  %vm565_vm5 = vcmp.eq.f32.partialorder %v564_v27, 8.507059e+37 }
 0x23f   : > { %v545_v6 = vadd.f32 %v797_v56, %v544_v2  ;;  %v613_v7 = vsub.f32 1.0, %v612_v3 }
 0x240   : > { %v801_v5 = vpop.eup %800 }
 0x241   : > { %v584_v36 = vmul.f32 %v801_v5, %v939_v58  ;;  %v482_v10 = vpop.xlane.xlu0 %481  ;;  %v803_v11 = vpop.eup %802  ;;  %v549_v12 = vsel %vm548_vm8, %v797_v56, %v545_v6  ;;  %v614_v13 = vmul.f32 %v799_v63, %v613_v7  ;;  %vm589_vm14 = vweird.f32 %v801_v5 }
 0x242   : > { %804 = vrcp.f32 %v482_v10  ;;  %v554_v14 = vsel %vm551_vm9, %v553_v9, %v549_v12  ;;  %v556_v17 = vmul.f32 %v803_v11, %v941_v30  ;;  %vm561_vm0 = vweird.f32 %v803_v11  ;;  %vm590_vm1 = vmor %vm588_vm15, %vm589_vm14 }
 0x243   : > { %v585_v16 = vsub.f32 1.0, %v584_v36  ;;  %v629_v18 = vmul.f32 %v909_v45, %v554_v14  ;;  %v615_v19 = vadd.f32 %v799_v63, %v614_v13  ;;  %v566_v45 = vand.u32 2147483648, %v941_v30  ;;  %vm562_vm4 = vmor %vm560_vm2, %vm561_vm0 }
 0x244   : > { %v557_v24 = vsub.f32 1.0, %v556_v17  ;;  %v608_v44 = vand.u32 2147483648, %v482_v10  ;;  %v606_v49 = vand.u32 2147483647, %v482_v10  ;;  %vm602_vm7 = vweird.f32 %v482_v10 }
 0x245   : > { %v586_v22 = vmul.f32 %v801_v5, %v585_v16  ;;  %639 = vst [vmem:[%s929_s19 + $0x20] sm:$0xff] %v629_v18  ;;  %v619_v26 = vsel %vm618_vm13, %v799_v63, %v615_v19  ;;  %v567_v40 = vor.u32 1.1754944e-38, %v566_v45 }
 0x246   : > { %v624_v28 = vsel %vm948_vm12, %v623_v20, %v619_v26  ;;  %v558_v31 = vmul.f32 %v803_v11, %v557_v24  ;;  %v609_v54 = vor.u32 1.1754944e-38, %v608_v44  ;;  %vm607_vm9 = vcmp.eq.f32.partialorder %v606_v49, 8.507059e+37 }
 0x247   : > { %v587_v29 = vadd.f32 %v801_v5, %v586_v22  ;;  %v634_v34 = vmul.f32 %v912_v47, %v624_v28 }
 0x248   : > { %v805_v33 = vpop.eup %804  ;;  %v559_v37 = vadd.f32 %v803_v11, %v558_v31 }
 0x249   : > { %v591_v35 = vsel %vm590_vm1, %v801_v5, %v587_v29  ;;  %v598_v38 = vmul.f32 %v805_v33, %v482_v10  ;;  %644 = vst [vmem:[%s929_s19 + $0x48] sm:$0xff] %v634_v34  ;;  %vm603_vm6 = vweird.f32 %v805_v33 }
 0x24a   : > { %v596_v39 = vsel %vm593_vm3, %v595_v25, %v591_v35  ;;  %v563_v42 = vsel %vm562_vm4, %v803_v11, %v559_v37  ;;  %vm604_vm8 = vmor %vm602_vm7, %vm603_vm6 }
 0x24b   : > { %v632_v41 = vmul.f32 %v915_v50, %v596_v39  ;;  %v599_v43 = vsub.f32 1.0, %v598_v38  ;;  %v568_v47 = vsel %vm565_vm5, %v567_v40, %v563_v42 }
 0x24c   : > { %v630_v46 = vmul.f32 %v917_v51, %v568_v47 }
 0x24d   : > { %642 = vst [vmem:[%s929_s19 + $0x38] sm:$0xff] %v632_v41  ;;  %v600_v48 = vmul.f32 %v805_v33, %v599_v43 }
 0x24e   : > { %640 = vst [vmem:[%s929_s19 + $0x28] sm:$0xff] %v630_v46 }
 0x24f   : > { %v601_v52 = vadd.f32 %v805_v33, %v600_v48 }
 0x251   : > { %v605_v55 = vsel %vm604_vm8, %v805_v33, %v601_v52 }
 0x252   : > { %v610_v50 = vsel %vm607_vm9, %v609_v54, %v605_v55 }
 0x253   : > { %v633_v56 = vmul.f32 %v921_v53, %v610_v50 }
 0x255   : > { %643 = vst [vmem:[%s929_s19 + $0x40] sm:$0xff] %v633_v56 }
 0x256 PF: > { %s15_s18 = sadd.s32 1, %s812_s18  }
 0x257   : > { %p12_p4 = scmp.ge.s32.totalorder %s15_s18, 4  }
 0x259   :  { %14 = sbr.rel (!%p12_p4) target bundleno = 1 (0x1), region = 70 }

</bundles_post_ra>
